<compile_context>
chip_gen: v5e
topology: v5e:2x2
jax: 0.10.0
libtpu: 0.0.40
codegen_flags: <defaults>
</compile_context>

<pallas_src>
import functools

import jax
import jax.numpy as jnp
from jax.experimental import pallas as pl
from jax.experimental.pallas import tpu as pltpu


def _graphsage_kernel(adj_ref, feat_ref, inv_ref, w_ref, b_ref, out_ref, *,
                      batch_tile, mean_agg, normalize_embedding):
    # Grid-invariant (resident) operands: fused weight [2*D_in, D_out] and bias.
    w = w_ref[...]
    bias = b_ref[...]

    # Static (unrolled) loop over the batch sub-tile: each iteration is plain
    # 2-D matmuls, which lower directly onto the MXU.
    for b in range(batch_tile):
        adj = adj_ref[b]                 # [N, N]     bf16 (or f32)
        feat = feat_ref[b]               # [N, D_in]  f32

        if mean_agg:
            # A_norm @ X == A @ (X * inv_deg[:, None]); scale features, not A.
            xs = feat * inv_ref[b]       # [N, D_in] * [N, 1]
        else:
            xs = feat
        xs = xs.astype(adj.dtype)

        # Neighborhood aggregation on the MXU, f32 accumulation.
        agg = jnp.dot(adj, xs, preferred_element_type=jnp.float32)   # [N, D_in] f32

        # Fused linear: concat([agg, X]) @ W_cat + b  -> single K=2*D_in matmul.
        cat = jnp.concatenate([agg, feat], axis=-1)                  # [N, 2*D_in]
        lin = jnp.dot(cat, w, preferred_element_type=jnp.float32) + bias

        if normalize_embedding:
            # F.normalize(x, p=2, dim=1): L2 over the node axis, eps = 1e-12.
            norm = jnp.sqrt(jnp.sum(lin * lin, axis=0, keepdims=True))   # [1, D_out]
            lin = lin * pl.reciprocal(jnp.maximum(norm, 1e-12), approx=False)

        out_ref[b] = lin


def graphsage_layer(new_features, adjacency, weight, bias, *,
                    aggregation="mean", normalize_embedding=True,
                    batch_tile=8, matmul_dtype=jnp.bfloat16):
    """
    new_features: [B, N, D_in]
    adjacency:    [B, N, N]
    weight:       [D_out, 2*D_in]   (nn.Linear convention, mean aggregation)
    bias:         [D_out] or None
    """
    x = new_features.astype(jnp.float32)
    a = adjacency.astype(jnp.float32)
    B, N, D_in = x.shape
    D_out = weight.shape[0]
    assert weight.shape[1] == 2 * D_in, "mean aggregation expects W of shape [D_out, 2*D_in]"

    mean_agg = (aggregation == "mean")

    # Column-degree reciprocal: a tiny [B, N, 1] tensor replaces dividing the
    # whole [B, N, N] adjacency. NOTE: matches PyTorch semantics exactly, so a
    # zero-degree column still produces inf/nan (no extra guard added).
    if mean_agg:
        inv_deg = (1.0 / jnp.sum(a, axis=-2)).reshape(B, N, 1)
    else:
        inv_deg = jnp.ones((B, N, 1), jnp.float32)

    # Dominant tensor in low precision for the MXU / HBM; accumulation stays f32.
    a_mm = a.astype(matmul_dtype)

    # Fused, pre-transposed weight for a single K=2*D_in matmul: cat @ W.T.
    w_cat = weight.astype(jnp.float32).T                      # [2*D_in, D_out]
    if bias is None:
        b_vec = jnp.zeros((1, D_out), jnp.float32)
    else:
        b_vec = bias.reshape(1, D_out).astype(jnp.float32)

    # Largest divisor of B that is <= batch_tile: batches per grid step.
    bt = max(1, min(batch_tile, B))
    while B % bt != 0:
        bt -= 1
    grid = (B // bt,)

    kernel = functools.partial(
        _graphsage_kernel,
        batch_tile=bt,
        mean_agg=mean_agg,
        normalize_embedding=normalize_embedding,
    )

    adj_itemsize = jnp.dtype(matmul_dtype).itemsize
    io_bytes = (B * N * N * adj_itemsize + x.size * 4 + inv_deg.size * 4
                + w_cat.size * 4 + b_vec.size * 4 + B * N * D_out * 4)
    cost = pl.CostEstimate(
        flops=2 * B * (N * N * D_in + N * (2 * D_in) * D_out),
        transcendentals=(2 * B * D_out) if normalize_embedding else 0,
        bytes_accessed=int(io_bytes),
    )

    # Per-step VMEM (x2 for double-buffered pipelined blocks) + resident weights.
    per_step = (2 * (bt * N * N * adj_itemsize
                     + bt * N * D_in * 4 + bt * N * 4 + bt * N * D_out * 4)
                + (w_cat.size + b_vec.size) * 4)
    vmem_limit = None
    if per_step > 12 * 1024 * 1024:
        vmem_limit = int(min(max(2 * per_step, 32 * 1024 * 1024), 64 * 1024 * 1024))

    return pl.pallas_call(
        kernel,
        out_shape=jax.ShapeDtypeStruct((B, N, D_out), jnp.float32),
        grid_spec=pltpu.PrefetchScalarGridSpec(
            num_scalar_prefetch=0,
            grid=grid,
            in_specs=[
                pl.BlockSpec((bt, N, N), lambda g: (g, 0, 0)),       # adjacency (bf16)
                pl.BlockSpec((bt, N, D_in), lambda g: (g, 0, 0)),    # features (f32)
                pl.BlockSpec((bt, N, 1), lambda g: (g, 0, 0)),       # 1 / column degree
                pl.BlockSpec((2 * D_in, D_out), lambda g: (0, 0)),   # fused weight (resident)
                pl.BlockSpec((1, D_out), lambda g: (0, 0)),          # bias (resident)
            ],
            out_specs=pl.BlockSpec((bt, N, D_out), lambda g: (g, 0, 0)),
        ),
        compiler_params=pltpu.CompilerParams(
            dimension_semantics=("parallel",),
            vmem_limit_bytes=vmem_limit,
        ),
        cost_estimate=cost,
    )(a_mm, x, inv_deg, w_cat, b_vec)


def _reference(new_features, adjacency, weight, bias, *,
               aggregation="mean", normalize_embedding=True):
    x = new_features.astype(jnp.float32)
    a = adjacency.astype(jnp.float32)
    if aggregation == "mean":
        a = a / jnp.sum(a, axis=-2, keepdims=True)
    agg = jnp.einsum("bij,bjd->bid", a, x)
    cat = jnp.concatenate([agg, x], axis=2)
    out = jnp.einsum("bnd,od->bno", cat, weight)
    if bias is not None:
        out = out + bias
    if normalize_embedding:
        nrm = jnp.sqrt(jnp.sum(out * out, axis=1, keepdims=True))
        out = out / jnp.maximum(nrm, 1e-12)
    return out


if __name__ == "__main__":
    # Module config: input_dim=16, output_dim=32, Bias=True,
    # normalize_embedding=True, dropout unused in forward, aggregation='mean'.
    B, N, D_in, D_out = 2, 8, 16, 32

    key = jax.random.PRNGKey(0)
    k_feat, k_adj, k_w, k_b = jax.random.split(key, 4)

    new_features = jax.random.normal(k_feat, (B, N, D_in), jnp.float32)
    # Strictly positive adjacency so column sums are non-zero (like A~ = A + I).
    adjacency = jax.random.uniform(k_adj, (B, N, N), jnp.float32, minval=0.1, maxval=1.0)

    bound = 1.0 / jnp.sqrt(2.0 * D_in)
    weight = jax.random.uniform(k_w, (D_out, 2 * D_in), jnp.float32, minval=-bound, maxval=bound)
    bias = jax.random.uniform(k_b, (D_out,), jnp.float32, minval=-bound, maxval=bound)

    ref = _reference(new_features, adjacency, weight, bias,
                     aggregation="mean", normalize_embedding=True)

    # Exact (f32 matmul) path: tight tolerance against the reference.
    out_f32 = graphsage_layer(new_features, adjacency, weight, bias,
                              aggregation="mean", normalize_embedding=True,
                              matmul_dtype=jnp.float32)
    out_f32 = jax.block_until_ready(out_f32)
    assert out_f32.shape == (B, N, D_out)
    assert jnp.allclose(out_f32, ref, atol=1e-4, rtol=1e-4), "f32 kernel mismatch vs reference"

    # Performance path (bf16 adjacency on the MXU): bf16-level tolerance.
    out_bf16 = graphsage_layer(new_features, adjacency, weight, bias,
                               aggregation="mean", normalize_embedding=True)
    out_bf16 = jax.block_until_ready(out_bf16)
    assert out_bf16.shape == (B, N, D_out)
    assert jnp.allclose(out_bf16, ref, atol=3e-2, rtol=3e-2), "bf16 kernel mismatch vs reference"

    print("KERNEL_OK")
</pallas_src>

<mosaic_0001>
module attributes {stable_mosaic.version = 11 : i64} {
  func.func @_graphsage_kernel(%arg0: i32, %arg1: memref<2x8x8xf32, #tpu.memory_space<vmem>>, %arg2: memref<2x8x16xf32, #tpu.memory_space<vmem>>, %arg3: memref<2x8x1xf32, #tpu.memory_space<vmem>>, %arg4: memref<32x32xf32, #tpu.memory_space<vmem>>, %arg5: memref<1x32xf32, #tpu.memory_space<vmem>>, %arg6: memref<2x8x32xf32, #tpu.memory_space<vmem>>) attributes {dimension_semantics = [#tpu.dimension_semantics<parallel>], iteration_bounds = array<i64: 1>, scalar_prefetch = 0 : i64, scratch_operands = 0 : i64, tpu.core_type = #tpu.core_type<tc>, window_params = [{transform_indices = @transform_0, window_bounds = array<i64: 2, 8, 8>}, {transform_indices = @transform_1, window_bounds = array<i64: 2, 8, 16>}, {transform_indices = @transform_2, window_bounds = array<i64: 2, 8, 1>}, {pipeline_mode = #tpu.pipeline_mode<synchronous>, transform_indices = @transform_3, window_bounds = array<i64: 32, 32>}, {pipeline_mode = #tpu.pipeline_mode<synchronous>, transform_indices = @transform_4, window_bounds = array<i64: 1, 32>}, {transform_indices = @transform_5, window_bounds = array<i64: 2, 8, 32>}]} {
    %c0 = arith.constant 0 : index
    %c0_0 = arith.constant 0 : index
    %0 = vector.load %arg4[%c0, %c0_0] : memref<32x32xf32, #tpu.memory_space<vmem>>, vector<32x32xf32>
    %c0_1 = arith.constant 0 : index
    %c0_2 = arith.constant 0 : index
    %1 = vector.load %arg5[%c0_1, %c0_2] : memref<1x32xf32, #tpu.memory_space<vmem>>, vector<1x32xf32>
    %c0_3 = arith.constant 0 : index
    %c0_4 = arith.constant 0 : index
    %c0_5 = arith.constant 0 : index
    %2 = vector.load %arg1[%c0_3, %c0_4, %c0_5] : memref<2x8x8xf32, #tpu.memory_space<vmem>>, vector<1x8x8xf32>
    %3 = vector.shape_cast %2 : vector<1x8x8xf32> to vector<8x8xf32>
    %c0_6 = arith.constant 0 : index
    %c0_7 = arith.constant 0 : index
    %c0_8 = arith.constant 0 : index
    %4 = vector.load %arg2[%c0_6, %c0_7, %c0_8] : memref<2x8x16xf32, #tpu.memory_space<vmem>>, vector<1x8x16xf32>
    %5 = vector.shape_cast %4 : vector<1x8x16xf32> to vector<8x16xf32>
    %c0_9 = arith.constant 0 : index
    %c0_10 = arith.constant 0 : index
    %c0_11 = arith.constant 0 : index
    %6 = vector.load %arg3[%c0_9, %c0_10, %c0_11] : memref<2x8x1xf32, #tpu.memory_space<vmem>>, vector<1x8x1xf32>
    %7 = vector.shape_cast %6 : vector<1x8x1xf32> to vector<8x1xf32>
    %8 = vector.broadcast %7 : vector<8x1xf32> to vector<8x16xf32>
    %9 = arith.mulf %5, %8 : vector<8x16xf32>
    %cst = arith.constant dense<0.000000e+00> : vector<8x16xf32>
    %10 = tpu.matmul %3, %9, %cst {dimension_numbers = #tpu.dot_dimension_numbers<[1], [0], [0], [1], [0, 0, 1, 1], [], []>} : vector<8x8xf32>, vector<8x16xf32>, vector<8x16xf32> -> vector<8x16xf32>
    %11 = tpu.concatenate %10, %5 in 1 : vector<8x16xf32>, vector<8x16xf32> -> vector<8x32xf32>
    %cst_12 = arith.constant dense<0.000000e+00> : vector<8x32xf32>
    %12 = tpu.matmul %11, %0, %cst_12 {dimension_numbers = #tpu.dot_dimension_numbers<[1], [0], [0], [1], [0, 0, 1, 1], [], []>} : vector<8x32xf32>, vector<32x32xf32>, vector<8x32xf32> -> vector<8x32xf32>
    %13 = vector.broadcast %1 : vector<1x32xf32> to vector<8x32xf32>
    %14 = arith.addf %12, %13 : vector<8x32xf32>
    %15 = arith.mulf %14, %14 : vector<8x32xf32>
    %cst_13 = arith.constant dense<0.000000e+00> : vector<32xf32>
    %16 = vector.multi_reduction <add>, %15, %cst_13 [0] : vector<8x32xf32> to vector<32xf32>
    %17 = vector.shape_cast %16 : vector<32xf32> to vector<1x32xf32>
    %18 = math.sqrt %17 : vector<1x32xf32>
    %cst_14 = arith.constant 9.99999996E-13 : f32
    %19 = vector.broadcast %cst_14 : f32 to vector<1x32xf32>
    %20 = arith.maximumf %18, %19 : vector<1x32xf32>
    %21 = tpu.reciprocal %20 : vector<1x32xf32> -> vector<1x32xf32>
    %22 = vector.broadcast %21 : vector<1x32xf32> to vector<8x32xf32>
    %23 = arith.mulf %14, %22 : vector<8x32xf32>
    %c0_15 = arith.constant 0 : index
    %c0_16 = arith.constant 0 : index
    %c0_17 = arith.constant 0 : index
    %24 = vector.load %arg6[%c0_15, %c0_16, %c0_17] : memref<2x8x32xf32, #tpu.memory_space<vmem>>, vector<1x8x32xf32>
    %25 = vector.shape_cast %24 : vector<1x8x32xf32> to vector<8x32xf32>
    %26 = vector.shape_cast %23 : vector<8x32xf32> to vector<1x8x32xf32>
    tpu.vector_store %arg6[%c0_15, %c0_16, %c0_17], %26 {strides = array<i32>} : memref<2x8x32xf32, #tpu.memory_space<vmem>>, vector<1x8x32xf32>,
    %c1 = arith.constant 1 : index
    %c0_18 = arith.constant 0 : index
    %c0_19 = arith.constant 0 : index
    %27 = vector.load %arg1[%c1, %c0_18, %c0_19] : memref<2x8x8xf32, #tpu.memory_space<vmem>>, vector<1x8x8xf32>
    %28 = vector.shape_cast %27 : vector<1x8x8xf32> to vector<8x8xf32>
    %c1_20 = arith.constant 1 : index
    %c0_21 = arith.constant 0 : index
    %c0_22 = arith.constant 0 : index
    %29 = vector.load %arg2[%c1_20, %c0_21, %c0_22] : memref<2x8x16xf32, #tpu.memory_space<vmem>>, vector<1x8x16xf32>
    %30 = vector.shape_cast %29 : vector<1x8x16xf32> to vector<8x16xf32>
    %c1_23 = arith.constant 1 : index
    %c0_24 = arith.constant 0 : index
    %c0_25 = arith.constant 0 : index
    %31 = vector.load %arg3[%c1_23, %c0_24, %c0_25] : memref<2x8x1xf32, #tpu.memory_space<vmem>>, vector<1x8x1xf32>
    %32 = vector.shape_cast %31 : vector<1x8x1xf32> to vector<8x1xf32>
    %33 = vector.broadcast %32 : vector<8x1xf32> to vector<8x16xf32>
    %34 = arith.mulf %30, %33 : vector<8x16xf32>
    %cst_26 = arith.constant dense<0.000000e+00> : vector<8x16xf32>
    %35 = tpu.matmul %28, %34, %cst_26 {dimension_numbers = #tpu.dot_dimension_numbers<[1], [0], [0], [1], [0, 0, 1, 1], [], []>} : vector<8x8xf32>, vector<8x16xf32>, vector<8x16xf32> -> vector<8x16xf32>
    %36 = tpu.concatenate %35, %30 in 1 : vector<8x16xf32>, vector<8x16xf32> -> vector<8x32xf32>
    %cst_27 = arith.constant dense<0.000000e+00> : vector<8x32xf32>
    %37 = tpu.matmul %36, %0, %cst_27 {dimension_numbers = #tpu.dot_dimension_numbers<[1], [0], [0], [1], [0, 0, 1, 1], [], []>} : vector<8x32xf32>, vector<32x32xf32>, vector<8x32xf32> -> vector<8x32xf32>
    %38 = vector.broadcast %1 : vector<1x32xf32> to vector<8x32xf32>
    %39 = arith.addf %37, %38 : vector<8x32xf32>
    %40 = arith.mulf %39, %39 : vector<8x32xf32>
    %cst_28 = arith.constant dense<0.000000e+00> : vector<32xf32>
    %41 = vector.multi_reduction <add>, %40, %cst_28 [0] : vector<8x32xf32> to vector<32xf32>
    %42 = vector.shape_cast %41 : vector<32xf32> to vector<1x32xf32>
    %43 = math.sqrt %42 : vector<1x32xf32>
    %cst_29 = arith.constant 9.99999996E-13 : f32
    %44 = vector.broadcast %cst_29 : f32 to vector<1x32xf32>
    %45 = arith.maximumf %43, %44 : vector<1x32xf32>
    %46 = tpu.reciprocal %45 : vector<1x32xf32> -> vector<1x32xf32>
    %47 = vector.broadcast %46 : vector<1x32xf32> to vector<8x32xf32>
    %48 = arith.mulf %39, %47 : vector<8x32xf32>
    %c1_30 = arith.constant 1 : index
    %c0_31 = arith.constant 0 : index
    %c0_32 = arith.constant 0 : index
    %49 = vector.load %arg6[%c1_30, %c0_31, %c0_32] : memref<2x8x32xf32, #tpu.memory_space<vmem>>, vector<1x8x32xf32>
    %50 = vector.shape_cast %49 : vector<1x8x32xf32> to vector<8x32xf32>
    %51 = vector.shape_cast %48 : vector<8x32xf32> to vector<1x8x32xf32>
    tpu.vector_store %arg6[%c1_30, %c0_31, %c0_32], %51 {strides = array<i32>} : memref<2x8x32xf32, #tpu.memory_space<vmem>>, vector<1x8x32xf32>,
    return
  }
  func.func @transform_0(%arg0: i32) -> (i32, i32, i32) {
    %c0_i32 = arith.constant 0 : i32
    %c0_i32_0 = arith.constant 0 : i32
    %c0_i32_1 = arith.constant 0 : i32
    return %arg0, %c0_i32, %c0_i32_0 : i32, i32, i32
  }
  func.func @transform_1(%arg0: i32) -> (i32, i32, i32) {
    %c0_i32 = arith.constant 0 : i32
    %c0_i32_0 = arith.constant 0 : i32
    %c0_i32_1 = arith.constant 0 : i32
    return %arg0, %c0_i32, %c0_i32_0 : i32, i32, i32
  }
  func.func @transform_2(%arg0: i32) -> (i32, i32, i32) {
    %c0_i32 = arith.constant 0 : i32
    %c0_i32_0 = arith.constant 0 : i32
    %c0_i32_1 = arith.constant 0 : i32
    return %arg0, %c0_i32, %c0_i32_0 : i32, i32, i32
  }
  func.func @transform_3(%arg0: i32) -> (i32, i32) {
    %c0_i32 = arith.constant 0 : i32
    %c0_i32_0 = arith.constant 0 : i32
    %c0_i32_1 = arith.constant 0 : i32
    return %c0_i32, %c0_i32_0 : i32, i32
  }
  func.func @transform_4(%arg0: i32) -> (i32, i32) {
    %c0_i32 = arith.constant 0 : i32
    %c0_i32_0 = arith.constant 0 : i32
    %c0_i32_1 = arith.constant 0 : i32
    return %c0_i32, %c0_i32_0 : i32, i32
  }
  func.func @transform_5(%arg0: i32) -> (i32, i32, i32) {
    %c0_i32 = arith.constant 0 : i32
    %c0_i32_0 = arith.constant 0 : i32
    %c0_i32_1 = arith.constant 0 : i32
    return %arg0, %c0_i32, %c0_i32_0 : i32, i32, i32
  }
}

</mosaic_0001>

<bundles_post_ra>
// kernel: tpu_custom_call.1
= control target key start
LH: loop header
LB: loop body
LE: loop exit
PB: predicated region body
PF: predicated region fallthrough
CT: control target
= control target key end

     0   :  { %10 = vsyncpa [#allocation3], 0  ;;  %s469_s0 = inlined_call_operand.vmem [shape: f32[2,8,8], index: 0, kind: input, shape index: {}]   ;;  %s470_s1 = inlined_call_operand.hbm [shape: f32[2,8,16], index: 1, kind: input, shape index: {}]   ;;  %s471_s2 = inlined_call_operand.vmem [shape: f32[2,8,1], index: 2, kind: input, shape index: {}]   ;;  %s472_s3 = inlined_call_operand.hbm [shape: f32[32,32], index: 3, kind: input, shape index: {}]   ;;  %s473_s4 = inlined_call_operand.vmem [shape: f32[1,32], index: 4, kind: input, shape index: {}]   ;;  %s474_s5 = inlined_call_operand.hbm [shape: f32[2,8,32], index: 5, kind: output, shape index: {}]  }
   0x1   :  { %11 = vsyncpa [#allocation6], 0 }
   0x2   :  { %12 = vsyncpa [#allocation4], 0  ;;  %s19_s20 = sshll.u32 %s470_s1, 4  ;;  %s383_s21 = smov [#allocation2]   ;;  %s20_s20 = int_to_ptr.hbm [resolvable:$true] %s19_s20 }
   0x3   :  { %s21_s22 = sshll.u32 %s383_s21, 4  ;;  %s34_s25 = sshll.u32 %s472_s3, 4  ;;  %s22_s22 = int_to_ptr.vmem [resolvable:$true] %s21_s22  ;;  %s35_s25 = int_to_ptr.hbm [resolvable:$true] %s34_s25 }
   0x4   :  { %s384_s26 = smov 128   ;;  %s385_s27 = smov 8  }
   0x5   :  { %27 = dma.hbm_to_vmem [thread:$0]  %s20_s20, 256, %s22_s22, [#allocation3], %s384_s26, %s384_s26, %s385_s27  }
   0x6   :  { %s386_s28 = smov [#allocation5]  }
   0x7   :  { %s36_s29 = sshll.u32 %s386_s28, 4  ;;  %s37_s29 = int_to_ptr.vmem [resolvable:$true] %s36_s29 }
   0x8   :  { %42 = dma.hbm_to_vmem [thread:$0]  %s35_s25, 512, %s37_s29, [#allocation6], %s384_s26, %s384_s26, %s385_s27  }
   0x9   :  { %377 = dma.done.wait [#allocation3], 256  }
   0xa   :  { %378 = vsyncadd [#allocation3], 4294967040 }
   0xb   :  { %379 = dma.done.wait [#allocation6], 512  }
   0xc   :  { %380 = vsyncadd [#allocation6], 4294966784  ;;  %v387_v0 = vmov 0   ;;  %v285_v1 = vld [vmem:[%s471_s2 + $0x8] sm:$0xff]  ;;  %v60_v2 = vld [vmem:[%s471_s2] sm:$0xff]  ;;  %s388_s7 = smov 16  }
   0xd   :  { %295 = vset.pattern.permute.xlu0 %v387_v0  ;;  %v164_v3 = vld [vmem:[#allocation2 + $0x8] sm:$0xff]  ;;  %v59_v4 = vld [vmem:[#allocation2] sm:$0xff]  ;;  %vm67_vm0 = vcmask 64512   ;;  %v54_v13 = vld [vmem:[#allocation5 + $0x8] sm:$0xff]  ;;  %vm95_vm1 = vcmask 130048   ;;  %vm100_vm2 = vcmask 261120  }
   0xe   :  { %169 = vperm.xlu0 %295, %v285_v1   ;;  %197 = vrot.lane.b32.xlu1 %v164_v3, %s388_s7  ;;  %v284_v7 = vld [vmem:[%s469_s0 + $0x8] sm:$0xff]  ;;  %v58_v10 = vld [vmem:[%s469_s0] sm:$0xff]  ;;  %v53_v14 = vld [vmem:[#allocation5] sm:$0xff]  ;;  %s268_s15 = sshll.u32 %s474_s5, 4  ;;  %s269_s15 = int_to_ptr.hbm [resolvable:$true] %s268_s15 }
   0xf   :  { %v56_v11 = vld [vmem:[#allocation5 + $0x18] sm:$0xff]  ;;  %v55_v12 = vld [vmem:[#allocation5 + $0x10] sm:$0xff] }
  0x10   :  { %216 = vmatpush.msra.mxu3 %v56_v11  ;;  %116 = vmatpush.msra.mxu1 %v56_v11  ;;  %v296_v21 = vld [vmem:[%s473_s4] ss:$0 sm:$0xff]  ;;  %s389_s4 = smov [#allocation7]  }
  0x11   :  { %s266_s12 = sshll.u32 %s389_s4, 4  ;;  %s267_s12 = int_to_ptr.vmem [resolvable:$true] %s266_s12 }
  0x12   :  { %217 = vmatpush.msra.mxu3 %v55_v12  ;;  %117 = vmatpush.msra.mxu1 %v55_v12 }
  0x14   :  { %218 = vmatpush.msra.mxu3 %v54_v13  ;;  %118 = vmatpush.msra.mxu1 %v54_v13 }
  0x16   :  { %63 = vperm.xlu0 %295, %v60_v2   ;;  %92 = vrot.lane.b32.xlu1 %v59_v4, %s388_s7 }
  0x17   :  { %219 = vmatpush.msra.mxu3 %v53_v14  ;;  %119 = vmatpush.msra.mxu1 %v53_v14 }
  0x80   :  { %v170_v5 = vpop.permute.xlu0 %169  ;;  %v198_v15 = vpop.permute.xlu1 %197 }
  0x81   :  { %v172_v6 = vmul.f32 %v170_v5, %v164_v3 }
  0x83   :  { %191 = vmatpush.msra.mxu2 %v172_v6 }
  0x84   :  { %286 = vmatmul.msk.f32.vlgmr.msra.gmra.mxu2 %vm67_vm0, %v284_v7 }
  0x88   :  { %v64_v8 = vpop.permute.xlu0 %63  ;;  %v93_v17 = vpop.permute.xlu1 %92 }
  0x89   :  { %v66_v9 = vmul.f32 %v64_v8, %v59_v4 }
  0x8b   :  { %86 = vmatpush.msra.mxu0 %v66_v9 }
  0x8c   :  { %282 = vmatmul.msk.f32.vlgmr.msra.gmra.mxu0 %vm67_vm0, %v58_v10 }
 0x107   :  { %v193_v16 = vpop.f32.mrf.mxu2 }
 0x108   :  { %v200_v18 = vsel %vm95_vm1, %v193_v16, %v198_v15 }
 0x109   :  { %v88_v19 = vpop.f32.mrf.mxu0  ;;  %287 = vmatmul.msk.f32.vlgmr.msra.gmra.mxu3 %vm100_vm2, %v200_v18 }
 0x10a   :  { %v96_v20 = vsel %vm95_vm1, %v88_v19, %v93_v17 }
 0x10b   :  { %283 = vmatmul.msk.f32.vlgmr.msra.gmra.mxu1 %vm100_vm2, %v96_v20 }
 0x188   :  { %v121_v22 = vpop.f32.mrf.mxu1 }
 0x189   :  { %v449_v23 = vadd.f32 %v296_v21, %v121_v22 }
 0x18b   :  { %v124_v24 = vmul.f32 %v449_v23, %v449_v23 }
 0x18c   :  { %v221_v25 = vpop.f32.mrf.mxu3 }
 0x18d   :  { %v125_v26 = vsel %vm100_vm2, %v124_v24, 0.0  ;;  %v454_v27 = vadd.f32 %v296_v21, %v221_v25 }
 0x18e   :  { %v126_v28 = vrot.slane %v125_v26, 4 }
 0x18f   :  { %v224_v29 = vmul.f32 %v454_v27, %v454_v27 }
 0x190   :  { %v127_v30 = vadd.f32 %v126_v28, %v125_v26 }
 0x191   :  { %v225_v31 = vsel %vm100_vm2, %v224_v29, 0.0 }
 0x192   :  { %v128_v32 = vrot.slane %v127_v30, 2  ;;  %v226_v33 = vrot.slane %v225_v31, 4 }
 0x194   :  { %v129_v34 = vadd.f32 %v128_v32, %v127_v30  ;;  %v227_v35 = vadd.f32 %v226_v33, %v225_v31 }
 0x196   :  { %v130_v36 = vrot.slane %v129_v34, 1  ;;  %v228_v37 = vrot.slane %v227_v35, 2 }
 0x198   :  { %v131_v38 = vadd.f32 %v130_v36, %v129_v34  ;;  %v229_v39 = vadd.f32 %v228_v37, %v227_v35 }
 0x19a   :  { %297 = vrsqrt.f32 %v131_v38  ;;  %v230_v40 = vrot.slane %v229_v39, 1  ;;  %vm139_vm3 = vcmp.eq.f32.partialorder %v131_v38, inf  ;;  %v142_v53 = vand.u32 2147483648, %v131_v38 }
 0x19b   :  { %vm141_vm4 = vcmp.eq.f32.partialorder %v131_v38, 0.0 }
 0x19c   :  { %v231_v41 = vadd.f32 %v230_v40, %v229_v39 }
 0x19e   :  { %299 = vrsqrt.f32 %v231_v41  ;;  %vm239_vm5 = vcmp.eq.f32.partialorder %v231_v41, inf  ;;  %v242_v60 = vand.u32 2147483648, %v231_v41  ;;  %vm241_vm6 = vcmp.eq.f32.partialorder %v231_v41, 0.0 }
 0x1a0   :  { %v298_v42 = vpop.eup %297 }
 0x1a1   :  { %v133_v43 = vmul.f32 %v298_v42, %v131_v38 }
 0x1a3   :  { %v134_v44 = vmul.f32 %v298_v42, %v133_v43 }
 0x1a4   :  { %v300_v45 = vpop.eup %299 }
 0x1a5   :  { %v135_v46 = vmul.f32 0.5, %v134_v44  ;;  %v233_v47 = vmul.f32 %v300_v45, %v231_v41 }
 0x1a7   :  { %v136_v48 = vsub.f32 1.5, %v135_v46  ;;  %v234_v49 = vmul.f32 %v300_v45, %v233_v47 }
 0x1a9   :  { %v137_v50 = vmul.f32 %v298_v42, %v136_v48  ;;  %v235_v51 = vmul.f32 0.5, %v234_v49 }
 0x1ab   :  { %v138_v52 = vmul.f32 %v137_v50, %v131_v38  ;;  %v236_v54 = vsub.f32 1.5, %v235_v51 }
 0x1ad   :  { %v140_v55 = vsel %vm139_vm3, %v131_v38, %v138_v52  ;;  %v237_v57 = vmul.f32 %v300_v45, %v236_v54 }
 0x1ae   :  { %v143_v56 = vsel %vm141_vm4, %v142_v53, %v140_v55 }
 0x1af   :  { %v144_v58 = vmax.f32 %v143_v56, 1e-12  ;;  %v238_v59 = vmul.f32 %v237_v57, %v231_v41 }
 0x1b1   :  { %301 = vrcp.f32 %v144_v58  ;;  %v240_v61 = vsel %vm239_vm5, %v231_v41, %v238_v59  ;;  %v156_v3 = vand.u32 2147483648, %v144_v58  ;;  %v154_v6 = vand.u32 2147483647, %v144_v58 }
 0x1b2   :  { %v243_v62 = vsel %vm241_vm6, %v242_v60, %v240_v61  ;;  %vm150_vm8 = vweird.f32 %v144_v58 }
 0x1b3   :  { %v244_v63 = vmax.f32 %v243_v62, 1e-12  ;;  %v157_v9 = vor.u32 1.1754944e-38, %v156_v3  ;;  %vm155_vm10 = vcmp.eq.f32.partialorder %v154_v6, 8.507059e+37 }
 0x1b5   :  { %303 = vrcp.f32 %v244_v63  ;;  %v256_v12 = vand.u32 2147483648, %v244_v63  ;;  %v254_v15 = vand.u32 2147483647, %v244_v63  ;;  %vm250_vm12 = vweird.f32 %v244_v63 }
 0x1b7   :  { %v302_v0 = vpop.eup %301  ;;  %v257_v18 = vor.u32 1.1754944e-38, %v256_v12  ;;  %vm255_vm14 = vcmp.eq.f32.partialorder %v254_v15, 8.507059e+37 }
 0x1b8   :  { %v146_v1 = vmul.f32 %v302_v0, %v144_v58  ;;  %vm151_vm7 = vweird.f32 %v302_v0 }
 0x1b9   :  { %vm152_vm9 = vmor %vm150_vm8, %vm151_vm7 }
 0x1ba   :  { %v147_v2 = vsub.f32 1.0, %v146_v1 }
 0x1bb   :  { %v304_v4 = vpop.eup %303 }
 0x1bc   :  { %v148_v5 = vmul.f32 %v302_v0, %v147_v2  ;;  %v246_v7 = vmul.f32 %v304_v4, %v244_v63  ;;  %vm251_vm11 = vweird.f32 %v304_v4 }
 0x1bd   :  { %vm252_vm13 = vmor %vm250_vm12, %vm251_vm11 }
 0x1be   :  { %v149_v8 = vadd.f32 %v302_v0, %v148_v5  ;;  %v247_v10 = vsub.f32 1.0, %v246_v7 }
 0x1c0   :  { %v153_v11 = vsel %vm152_vm9, %v302_v0, %v149_v8  ;;  %v248_v14 = vmul.f32 %v304_v4, %v247_v10 }
 0x1c1   :  { %v158_v13 = vsel %vm155_vm10, %v157_v9, %v153_v11 }
 0x1c2   :  { %v159_v16 = vmul.f32 %v158_v13, %v449_v23  ;;  %v249_v17 = vadd.f32 %v304_v4, %v248_v14 }
 0x1c4   :  { %160 = vst.msk [vmem:[#allocation7] sm:$0xff] %vm100_vm2, %v159_v16  ;;  %v253_v19 = vsel %vm252_vm13, %v304_v4, %v249_v17 }
 0x1c5   :  { %v258_v20 = vsel %vm255_vm14, %v257_v18, %v253_v19 }
 0x1c6   :  { %v259_v21 = vmul.f32 %v258_v20, %v454_v27 }
 0x1c8   :  { %261 = vst.msk [vmem:[#allocation7 + $0x8] sm:$0xff] %vm100_vm2, %v259_v21 }
 0x1c9   :  { %274 = dma.vmem_to_hbm [thread:$0]  %s267_s12, 256, %s269_s15, [#allocation4], %s384_s26, %s384_s26, %s385_s27  }
 0x1ca   :  { %381 = dma.done.wait [#allocation4], 256  }
 0x1cb   :  { %382 = vsyncadd [#allocation4], 4294967040 }
 0x1cc   :  { %279 = vsyncpa [#allocation3], 1 }
 0x1cd   :  { %280 = vsyncpa [#allocation6], 1 }
 0x1ce   :  { %281 = vsyncpa [#allocation4], 1 }

</bundles_post_ra>
